<compile_context>
chip_gen: v6e
topology: v6e:2x2x1
jax: 0.10.0
libtpu: 0.0.40
codegen_flags: <defaults>
</compile_context>

<pallas_src>
import functools

import numpy as np
import jax
import jax.numpy as jnp
from jax.experimental import pallas as pl
from jax.experimental.pallas import tpu as pltpu


def _flow_convnet_kernel(*refs, W, has_ctx, cin_pad, cout_pad):
    if has_ctx:
        (x_ref, ctx_ref, masks_ref, w1s_ref, w2_ref, b2_ref,
         w3s_ref, b3_ref, out_ref, stk_ref) = refs
    else:
        (x_ref, masks_ref, w1s_ref, w2_ref, b2_ref,
         w3s_ref, b3_ref, out_ref, stk_ref) = refs
        ctx_ref = None

    NB = x_ref.shape[1]
    Cout = out_ref.shape[0]
    K_taps = 9 * cin_pad

    # Static flat-index offset per tap.  The precomputed boundary masks make
    # cross-row / cross-image wraparound lanes harmless (they are zeroed).
    shifts = [(-(dy * W + dx)) % NB for dy in (-1, 0, 1) for dx in (-1, 0, 1)]

    # Channels-first input tile: [image channels ; context channels ; zero pad].
    # The context is constant per image, so rolling it (below) is a no-op at
    # every lane the masks keep - it can ride along with the image channels.
    parts = [x_ref[...]]
    used = x_ref.shape[0]
    if ctx_ref is not None:
        parts.append(ctx_ref[...])
        used += ctx_ref.shape[0]
    if used < cin_pad:
        parts.append(jnp.zeros((cin_pad - used, NB), jnp.float32))
    xin = parts[0] if len(parts) == 1 else jnp.concatenate(parts, axis=0)

    # ---- conv1 (3x3, pad=1): ONE K-stacked MXU matmul ----------------------
    # Each tap's rolled+masked operand lands in an 8-row-aligned slice of the
    # VMEM scratch; the bias is folded in via a ones row.
    for t in range(9):
        if t == 4:                                    # centre tap: no shift, full mask
            patch = xin
        else:
            patch = pltpu.roll(xin, shift=shifts[t], axis=1) * masks_ref[t]
        stk_ref[pl.ds(t * cin_pad, cin_pad), :] = patch
    row = jax.lax.broadcasted_iota(jnp.int32, (cin_pad, NB), 0)
    stk_ref[pl.ds(K_taps, cin_pad), :] = (row == 0).astype(jnp.float32)

    h1 = jnp.maximum(
        jnp.dot(w1s_ref[...], stk_ref[...], preferred_element_type=jnp.float32),
        0.0)

    # ---- conv2 (1x1) + ReLU -------------------------------------------------
    h2 = jnp.maximum(
        jnp.dot(w2_ref[...], h1, preferred_element_type=jnp.float32) + b2_ref[...],
        0.0)

    # ---- conv3 (3x3, pad=1): matmul FIRST on unshifted h2, roll/mask after --
    # r has the 9 per-tap results stacked on 8-row boundaries; rolls, selects
    # and accumulates operate on (cout_pad, NB) instead of (Ch, NB).
    r = jnp.dot(w3s_ref[...], h2, preferred_element_type=jnp.float32)  # (9*cout_pad, NB)
    acc = r[4 * cout_pad:5 * cout_pad, :]                              # centre tap
    for t in range(9):
        if t == 4:
            continue
        rt = r[t * cout_pad:(t + 1) * cout_pad, :]
        acc = acc + pltpu.roll(rt, shift=shifts[t], axis=1) * masks_ref[t]

    out_ref[...] = acc[:Cout, :] + b3_ref[...]


def basic_flow_convnet(x, context, params, param_dims, *, block_batch=None):
    """x: (B, H, W, Cin_x) NHWC, context: (B, ctx) or None. Returns a tuple of
    (B, H, W, d) arrays split per param_dims (matches the torch module)."""
    w1, b1, w2, b2, w3, b3 = params          # w*: HWIO, b*: (Cout,)
    B, H, W, Cx = x.shape
    HW = H * W
    has_ctx = context is not None
    Cctx = context.shape[-1] if has_ctx else 0
    Cin = Cx + Cctx
    Ch = w2.shape[-1]
    Cout = w3.shape[-1]
    cin_pad = -(-Cin // 8) * 8
    cout_pad = -(-Cout // 8) * 8
    K1 = 9 * cin_pad + cin_pad               # taps + bias block

    # --- batch fold: big blocks amortize grid overhead, but keep >= 2 steps
    # when B >= 2 so both v7x TensorCores get work.
    if block_batch is None:
        bb = min(B, 32)
        if B >= 2 and B // bb < 2:
            bb = B // 2
    else:
        bb = min(block_batch, B)
    bb = max(bb, 1)
    while B % bb:
        bb -= 1
    if (bb * HW) % 128 != 0:                 # lane blocks must be 128-aligned unless full
        bb = B
    nsteps = B // bb
    NB = bb * HW

    # --- layout plumbing (wrapper side) ---------------------------------------
    # TODO(synk): the NHWC->channels-first transpose of x and the output
    # transpose back to NHWC are still XLA ops outside the kernel (one small HBM
    # round trip each on 4-channel data); fold in-kernel if they show in profiles.
    x_cf = jnp.transpose(x, (3, 0, 1, 2)).reshape(Cx, B * HW).astype(jnp.float32)

    inputs = [x_cf]
    in_specs = [pl.BlockSpec((Cx, NB), lambda b: (0, b))]
    if has_ctx:
        ctx_exp = jnp.broadcast_to(
            context.astype(jnp.float32).T[:, :, None], (Cctx, B, HW)
        ).reshape(Cctx, B * HW)
        inputs.append(ctx_exp)
        in_specs.append(pl.BlockSpec((Cctx, NB), lambda b: (0, b)))

    # Precomputed boundary masks (pattern repeats per image -> same for every block).
    n = np.arange(NB)
    p = n % HW
    yy = p // W
    xx = p % W
    mask_list = []
    for dy in (-1, 0, 1):
        for dx in (-1, 0, 1):
            m = (yy >= -dy) & (yy < H - dy) & (xx >= -dx) & (xx < W - dx)
            mask_list.append(m.astype(np.float32))
    masks = jnp.asarray(np.stack(mask_list)[:, None, :])      # (9, 1, NB)
    inputs.append(masks)
    in_specs.append(pl.BlockSpec((9, 1, NB), lambda b: (0, 0, 0)))

    # Stacked conv1 weights (Ch, 9*cin_pad + cin_pad); bias folded as a column.
    w1_t = jnp.transpose(w1.astype(jnp.float32), (0, 1, 3, 2)).reshape(9, Ch, Cin)
    w1_pad = jnp.pad(w1_t, ((0, 0), (0, 0), (0, cin_pad - Cin)))
    w1s = jnp.transpose(w1_pad, (1, 0, 2)).reshape(Ch, 9 * cin_pad)
    bias_blk = jnp.pad(b1.astype(jnp.float32)[:, None], ((0, 0), (0, cin_pad - 1)))
    w1s = jnp.concatenate([w1s, bias_blk], axis=1)             # (Ch, K1)

    w2_cf = w2.astype(jnp.float32).reshape(Ch, Ch).T
    b2_cf = b2.astype(jnp.float32).reshape(Ch, 1)

    # Stacked conv3 weights (9*cout_pad, Ch): per-tap rows on 8-row boundaries.
    w3_t = jnp.transpose(w3.astype(jnp.float32), (0, 1, 3, 2)).reshape(9, Cout, Ch)
    w3s = jnp.pad(w3_t, ((0, 0), (0, cout_pad - Cout), (0, 0))).reshape(9 * cout_pad, Ch)
    b3_cf = b3.astype(jnp.float32).reshape(Cout, 1)

    inputs += [w1s, w2_cf, b2_cf, w3s, b3_cf]
    in_specs += [
        pl.BlockSpec((Ch, K1), lambda b: (0, 0)),
        pl.BlockSpec((Ch, Ch), lambda b: (0, 0)),
        pl.BlockSpec((Ch, 1), lambda b: (0, 0)),
        pl.BlockSpec((9 * cout_pad, Ch), lambda b: (0, 0)),
        pl.BlockSpec((Cout, 1), lambda b: (0, 0)),
    ]

    kernel = functools.partial(_flow_convnet_kernel, W=W, has_ctx=has_ctx,
                               cin_pad=cin_pad, cout_pad=cout_pad)

    out_cf = pl.pallas_call(
        kernel,
        out_shape=jax.ShapeDtypeStruct((Cout, B * HW), jnp.float32),
        grid_spec=pltpu.PrefetchScalarGridSpec(
            num_scalar_prefetch=0,
            grid=(nsteps,),
            in_specs=in_specs,
            out_specs=pl.BlockSpec((Cout, NB), lambda b: (0, b)),
            scratch_shapes=[pltpu.VMEM((K1, NB), jnp.float32)],
        ),
        compiler_params=pltpu.CompilerParams(
            dimension_semantics=("parallel",),
            vmem_limit_bytes=32 * 1024 * 1024),
    )(*inputs)

    # Back to NHWC and split per param_dims (glue, matches the torch module).
    out = jnp.transpose(out_cf.reshape(Cout, B, H, W), (1, 2, 3, 0))
    if len(param_dims) > 1:
        ends = np.cumsum(param_dims)
        starts = np.concatenate([[0], ends[:-1]])
        outs = tuple(out[..., int(s):int(e)] for s, e in zip(starts, ends))
    else:
        outs = out
    # TODO(synk): param_nonlinearities is None in the reference config; apply
    # them here per split output if ever provided.
    return outs


if __name__ == "__main__":
    B, H, W = 2, 16, 16
    in_channels = 4
    context_dims = 3
    hidden_channels = 32
    param_dims = (2, 2)
    Cin = in_channels + context_dims
    Cout = sum(param_dims)

    key = jax.random.PRNGKey(0)
    kx, kc, k1, k2, k3 = jax.random.split(key, 5)
    x = jax.random.normal(kx, (B, H, W, in_channels), jnp.float32)
    context = jax.random.normal(kc, (B, context_dims), jnp.float32)

    # Module's weights_init: Conv2d weights ~ N(0, 0.0001), biases = 0.
    w1 = 1e-4 * jax.random.normal(k1, (3, 3, Cin, hidden_channels), jnp.float32)
    b1 = jnp.zeros((hidden_channels,), jnp.float32)
    w2 = 1e-4 * jax.random.normal(k2, (1, 1, hidden_channels, hidden_channels),
                                  jnp.float32)
    b2 = jnp.zeros((hidden_channels,), jnp.float32)
    w3 = 1e-4 * jax.random.normal(k3, (3, 3, hidden_channels, Cout), jnp.float32)
    b3 = jnp.zeros((Cout,), jnp.float32)
    params = (w1, b1, w2, b2, w3, b3)

    outs = jax.block_until_ready(
        basic_flow_convnet(x, context, params, param_dims))

    # Pure-JAX reference for a sanity check.
    def ref_forward(x, context):
        ctx = jnp.broadcast_to(context[:, None, None, :], (B, H, W, context_dims))
        z = jnp.concatenate([x, ctx], axis=-1)
        conv = functools.partial(
            jax.lax.conv_general_dilated,
            window_strides=(1, 1), padding="SAME",
            dimension_numbers=("NHWC", "HWIO", "NHWC"),
            precision=jax.lax.Precision.HIGHEST)
        z = jax.nn.relu(conv(z, w1) + b1)
        z = jax.nn.relu(conv(z, w2) + b2)
        return conv(z, w3) + b3

    ref = ref_forward(x, context)
    got = jnp.concatenate(outs, axis=-1)
    np.testing.assert_allclose(np.asarray(got), np.asarray(ref),
                               rtol=1e-3, atol=1e-11)
    print("KERNEL_OK")
</pallas_src>

<mosaic_0001>
module attributes {stable_mosaic.version = 11 : i64} {
  func.func @_flow_convnet_kernel(%arg0: i32, %arg1: memref<4x256xf32, #tpu.memory_space<vmem>>, %arg2: memref<3x256xf32, #tpu.memory_space<vmem>>, %arg3: memref<9x1x256xf32, #tpu.memory_space<vmem>>, %arg4: memref<32x80xf32, #tpu.memory_space<vmem>>, %arg5: memref<32x32xf32, #tpu.memory_space<vmem>>, %arg6: memref<32x1xf32, #tpu.memory_space<vmem>>, %arg7: memref<72x32xf32, #tpu.memory_space<vmem>>, %arg8: memref<4x1xf32, #tpu.memory_space<vmem>>, %arg9: memref<4x256xf32, #tpu.memory_space<vmem>>, %arg10: memref<80x256xf32, #tpu.memory_space<vmem>>) attributes {dimension_semantics = [#tpu.dimension_semantics<parallel>], iteration_bounds = array<i64: 2>, scalar_prefetch = 0 : i64, scratch_operands = 1 : i64, tpu.core_type = #tpu.core_type<tc>, window_params = [{transform_indices = @transform_0, window_bounds = array<i64: 4, 256>}, {transform_indices = @transform_1, window_bounds = array<i64: 3, 256>}, {pipeline_mode = #tpu.pipeline_mode<synchronous>, transform_indices = @transform_2, window_bounds = array<i64: 9, 1, 256>}, {pipeline_mode = #tpu.pipeline_mode<synchronous>, transform_indices = @transform_3, window_bounds = array<i64: 32, 80>}, {pipeline_mode = #tpu.pipeline_mode<synchronous>, transform_indices = @transform_4, window_bounds = array<i64: 32, 32>}, {pipeline_mode = #tpu.pipeline_mode<synchronous>, transform_indices = @transform_5, window_bounds = array<i64: 32, 1>}, {pipeline_mode = #tpu.pipeline_mode<synchronous>, transform_indices = @transform_6, window_bounds = array<i64: 72, 32>}, {pipeline_mode = #tpu.pipeline_mode<synchronous>, transform_indices = @transform_7, window_bounds = array<i64: 4, 1>}, {transform_indices = @transform_8, window_bounds = array<i64: 4, 256>}]} {
    %c0 = arith.constant 0 : index
    %c0_0 = arith.constant 0 : index
    %0 = vector.load %arg1[%c0, %c0_0] : memref<4x256xf32, #tpu.memory_space<vmem>>, vector<4x256xf32>
    %c0_1 = arith.constant 0 : index
    %c0_2 = arith.constant 0 : index
    %1 = vector.load %arg2[%c0_1, %c0_2] : memref<3x256xf32, #tpu.memory_space<vmem>>, vector<3x256xf32>
    %cst = arith.constant 0.000000e+00 : f32
    %2 = vector.broadcast %cst : f32 to vector<1x256xf32>
    %3 = tpu.concatenate %0, %1, %2 in 0 : vector<4x256xf32>, vector<3x256xf32>, vector<1x256xf32> -> vector<8x256xf32>
    %c17_i32 = arith.constant 17 : i32
    %4 = tpu.dynamic_rotate %3 by %c17_i32 dim 1 : vector<8x256xf32>, i32 -> vector<8x256xf32>
    %c0_3 = arith.constant 0 : index
    %c0_4 = arith.constant 0 : index
    %c0_5 = arith.constant 0 : index
    %5 = vector.load %arg3[%c0_3, %c0_4, %c0_5] : memref<9x1x256xf32, #tpu.memory_space<vmem>>, vector<1x1x256xf32>
    %6 = vector.shape_cast %5 : vector<1x1x256xf32> to vector<1x256xf32>
    %7 = vector.broadcast %6 : vector<1x256xf32> to vector<8x256xf32>
    %8 = arith.mulf %4, %7 : vector<8x256xf32>
    %c0_6 = arith.constant 0 : index
    %c0_7 = arith.constant 0 : index
    %9 = vector.load %arg10[%c0_6, %c0_7] : memref<80x256xf32, #tpu.memory_space<vmem>>, vector<8x256xf32>
    tpu.vector_store %arg10[%c0_6, %c0_7], %8 {strides = array<i32>} : memref<80x256xf32, #tpu.memory_space<vmem>>, vector<8x256xf32>,
    %c16_i32 = arith.constant 16 : i32
    %10 = tpu.dynamic_rotate %3 by %c16_i32 dim 1 : vector<8x256xf32>, i32 -> vector<8x256xf32>
    %c1 = arith.constant 1 : index
    %c0_8 = arith.constant 0 : index
    %c0_9 = arith.constant 0 : index
    %11 = vector.load %arg3[%c1, %c0_8, %c0_9] : memref<9x1x256xf32, #tpu.memory_space<vmem>>, vector<1x1x256xf32>
    %12 = vector.shape_cast %11 : vector<1x1x256xf32> to vector<1x256xf32>
    %13 = vector.broadcast %12 : vector<1x256xf32> to vector<8x256xf32>
    %14 = arith.mulf %10, %13 : vector<8x256xf32>
    %c8 = arith.constant 8 : index
    %c0_10 = arith.constant 0 : index
    %15 = vector.load %arg10[%c8, %c0_10] : memref<80x256xf32, #tpu.memory_space<vmem>>, vector<8x256xf32>
    tpu.vector_store %arg10[%c8, %c0_10], %14 {strides = array<i32>} : memref<80x256xf32, #tpu.memory_space<vmem>>, vector<8x256xf32>,
    %c15_i32 = arith.constant 15 : i32
    %16 = tpu.dynamic_rotate %3 by %c15_i32 dim 1 : vector<8x256xf32>, i32 -> vector<8x256xf32>
    %c2 = arith.constant 2 : index
    %c0_11 = arith.constant 0 : index
    %c0_12 = arith.constant 0 : index
    %17 = vector.load %arg3[%c2, %c0_11, %c0_12] : memref<9x1x256xf32, #tpu.memory_space<vmem>>, vector<1x1x256xf32>
    %18 = vector.shape_cast %17 : vector<1x1x256xf32> to vector<1x256xf32>
    %19 = vector.broadcast %18 : vector<1x256xf32> to vector<8x256xf32>
    %20 = arith.mulf %16, %19 : vector<8x256xf32>
    %c16 = arith.constant 16 : index
    %c0_13 = arith.constant 0 : index
    %21 = vector.load %arg10[%c16, %c0_13] : memref<80x256xf32, #tpu.memory_space<vmem>>, vector<8x256xf32>
    tpu.vector_store %arg10[%c16, %c0_13], %20 {strides = array<i32>} : memref<80x256xf32, #tpu.memory_space<vmem>>, vector<8x256xf32>,
    %c1_i32 = arith.constant 1 : i32
    %22 = tpu.dynamic_rotate %3 by %c1_i32 dim 1 : vector<8x256xf32>, i32 -> vector<8x256xf32>
    %c3 = arith.constant 3 : index
    %c0_14 = arith.constant 0 : index
    %c0_15 = arith.constant 0 : index
    %23 = vector.load %arg3[%c3, %c0_14, %c0_15] : memref<9x1x256xf32, #tpu.memory_space<vmem>>, vector<1x1x256xf32>
    %24 = vector.shape_cast %23 : vector<1x1x256xf32> to vector<1x256xf32>
    %25 = vector.broadcast %24 : vector<1x256xf32> to vector<8x256xf32>
    %26 = arith.mulf %22, %25 : vector<8x256xf32>
    %c24 = arith.constant 24 : index
    %c0_16 = arith.constant 0 : index
    %27 = vector.load %arg10[%c24, %c0_16] : memref<80x256xf32, #tpu.memory_space<vmem>>, vector<8x256xf32>
    tpu.vector_store %arg10[%c24, %c0_16], %26 {strides = array<i32>} : memref<80x256xf32, #tpu.memory_space<vmem>>, vector<8x256xf32>,
    %c32 = arith.constant 32 : index
    %c0_17 = arith.constant 0 : index
    %28 = vector.load %arg10[%c32, %c0_17] : memref<80x256xf32, #tpu.memory_space<vmem>>, vector<8x256xf32>
    tpu.vector_store %arg10[%c32, %c0_17], %3 {strides = array<i32>} : memref<80x256xf32, #tpu.memory_space<vmem>>, vector<8x256xf32>,
    %c255_i32 = arith.constant 255 : i32
    %29 = tpu.dynamic_rotate %3 by %c255_i32 dim 1 : vector<8x256xf32>, i32 -> vector<8x256xf32>
    %c5 = arith.constant 5 : index
    %c0_18 = arith.constant 0 : index
    %c0_19 = arith.constant 0 : index
    %30 = vector.load %arg3[%c5, %c0_18, %c0_19] : memref<9x1x256xf32, #tpu.memory_space<vmem>>, vector<1x1x256xf32>
    %31 = vector.shape_cast %30 : vector<1x1x256xf32> to vector<1x256xf32>
    %32 = vector.broadcast %31 : vector<1x256xf32> to vector<8x256xf32>
    %33 = arith.mulf %29, %32 : vector<8x256xf32>
    %c40 = arith.constant 40 : index
    %c0_20 = arith.constant 0 : index
    %34 = vector.load %arg10[%c40, %c0_20] : memref<80x256xf32, #tpu.memory_space<vmem>>, vector<8x256xf32>
    tpu.vector_store %arg10[%c40, %c0_20], %33 {strides = array<i32>} : memref<80x256xf32, #tpu.memory_space<vmem>>, vector<8x256xf32>,
    %c241_i32 = arith.constant 241 : i32
    %35 = tpu.dynamic_rotate %3 by %c241_i32 dim 1 : vector<8x256xf32>, i32 -> vector<8x256xf32>
    %c6 = arith.constant 6 : index
    %c0_21 = arith.constant 0 : index
    %c0_22 = arith.constant 0 : index
    %36 = vector.load %arg3[%c6, %c0_21, %c0_22] : memref<9x1x256xf32, #tpu.memory_space<vmem>>, vector<1x1x256xf32>
    %37 = vector.shape_cast %36 : vector<1x1x256xf32> to vector<1x256xf32>
    %38 = vector.broadcast %37 : vector<1x256xf32> to vector<8x256xf32>
    %39 = arith.mulf %35, %38 : vector<8x256xf32>
    %c48 = arith.constant 48 : index
    %c0_23 = arith.constant 0 : index
    %40 = vector.load %arg10[%c48, %c0_23] : memref<80x256xf32, #tpu.memory_space<vmem>>, vector<8x256xf32>
    tpu.vector_store %arg10[%c48, %c0_23], %39 {strides = array<i32>} : memref<80x256xf32, #tpu.memory_space<vmem>>, vector<8x256xf32>,
    %c240_i32 = arith.constant 240 : i32
    %41 = tpu.dynamic_rotate %3 by %c240_i32 dim 1 : vector<8x256xf32>, i32 -> vector<8x256xf32>
    %c7 = arith.constant 7 : index
    %c0_24 = arith.constant 0 : index
    %c0_25 = arith.constant 0 : index
    %42 = vector.load %arg3[%c7, %c0_24, %c0_25] : memref<9x1x256xf32, #tpu.memory_space<vmem>>, vector<1x1x256xf32>
    %43 = vector.shape_cast %42 : vector<1x1x256xf32> to vector<1x256xf32>
    %44 = vector.broadcast %43 : vector<1x256xf32> to vector<8x256xf32>
    %45 = arith.mulf %41, %44 : vector<8x256xf32>
    %c56 = arith.constant 56 : index
    %c0_26 = arith.constant 0 : index
    %46 = vector.load %arg10[%c56, %c0_26] : memref<80x256xf32, #tpu.memory_space<vmem>>, vector<8x256xf32>
    tpu.vector_store %arg10[%c56, %c0_26], %45 {strides = array<i32>} : memref<80x256xf32, #tpu.memory_space<vmem>>, vector<8x256xf32>,
    %c239_i32 = arith.constant 239 : i32
    %47 = tpu.dynamic_rotate %3 by %c239_i32 dim 1 : vector<8x256xf32>, i32 -> vector<8x256xf32>
    %c8_27 = arith.constant 8 : index
    %c0_28 = arith.constant 0 : index
    %c0_29 = arith.constant 0 : index
    %48 = vector.load %arg3[%c8_27, %c0_28, %c0_29] : memref<9x1x256xf32, #tpu.memory_space<vmem>>, vector<1x1x256xf32>
    %49 = vector.shape_cast %48 : vector<1x1x256xf32> to vector<1x256xf32>
    %50 = vector.broadcast %49 : vector<1x256xf32> to vector<8x256xf32>
    %51 = arith.mulf %47, %50 : vector<8x256xf32>
    %c64 = arith.constant 64 : index
    %c0_30 = arith.constant 0 : index
    %52 = vector.load %arg10[%c64, %c0_30] : memref<80x256xf32, #tpu.memory_space<vmem>>, vector<8x256xf32>
    tpu.vector_store %arg10[%c64, %c0_30], %51 {strides = array<i32>} : memref<80x256xf32, #tpu.memory_space<vmem>>, vector<8x256xf32>,
    %53 = tpu.iota {dimensions = array<i32: 0>} : vector<8x256xi32>
    %c0_i32 = arith.constant 0 : i32
    %54 = vector.broadcast %c0_i32 : i32 to vector<8x256xi32>
    %55 = arith.cmpi eq, %53, %54 : vector<8x256xi32>
    %56 = arith.extui %55 : vector<8x256xi1> to vector<8x256xi32>
    %57 = arith.sitofp %56 : vector<8x256xi32> to vector<8x256xf32>
    %c72 = arith.constant 72 : index
    %c0_31 = arith.constant 0 : index
    %58 = vector.load %arg10[%c72, %c0_31] : memref<80x256xf32, #tpu.memory_space<vmem>>, vector<8x256xf32>
    tpu.vector_store %arg10[%c72, %c0_31], %57 {strides = array<i32>} : memref<80x256xf32, #tpu.memory_space<vmem>>, vector<8x256xf32>,
    %c0_32 = arith.constant 0 : index
    %c0_33 = arith.constant 0 : index
    %59 = vector.load %arg4[%c0_32, %c0_33] : memref<32x80xf32, #tpu.memory_space<vmem>>, vector<32x80xf32>
    %c0_34 = arith.constant 0 : index
    %c0_35 = arith.constant 0 : index
    %60 = vector.load %arg10[%c0_34, %c0_35] : memref<80x256xf32, #tpu.memory_space<vmem>>, vector<80x256xf32>
    %cst_36 = arith.constant dense<0.000000e+00> : vector<32x256xf32>
    %61 = tpu.matmul %59, %60, %cst_36 {dimension_numbers = #tpu.dot_dimension_numbers<[1], [0], [0], [1], [0, 0, 1, 1], [], []>} : vector<32x80xf32>, vector<80x256xf32>, vector<32x256xf32> -> vector<32x256xf32>
    %cst_37 = arith.constant 0.000000e+00 : f32
    %62 = vector.broadcast %cst_37 : f32 to vector<32x256xf32>
    %63 = arith.maximumf %61, %62 : vector<32x256xf32>
    %c0_38 = arith.constant 0 : index
    %c0_39 = arith.constant 0 : index
    %64 = vector.load %arg5[%c0_38, %c0_39] : memref<32x32xf32, #tpu.memory_space<vmem>>, vector<32x32xf32>
    %cst_40 = arith.constant dense<0.000000e+00> : vector<32x256xf32>
    %65 = tpu.matmul %64, %63, %cst_40 {dimension_numbers = #tpu.dot_dimension_numbers<[1], [0], [0], [1], [0, 0, 1, 1], [], []>} : vector<32x32xf32>, vector<32x256xf32>, vector<32x256xf32> -> vector<32x256xf32>
    %c0_41 = arith.constant 0 : index
    %c0_42 = arith.constant 0 : index
    %66 = vector.load %arg6[%c0_41, %c0_42] : memref<32x1xf32, #tpu.memory_space<vmem>>, vector<32x1xf32>
    %67 = vector.broadcast %66 : vector<32x1xf32> to vector<32x256xf32>
    %68 = arith.addf %65, %67 : vector<32x256xf32>
    %cst_43 = arith.constant 0.000000e+00 : f32
    %69 = vector.broadcast %cst_43 : f32 to vector<32x256xf32>
    %70 = arith.maximumf %68, %69 : vector<32x256xf32>
    %c0_44 = arith.constant 0 : index
    %c0_45 = arith.constant 0 : index
    %71 = vector.load %arg7[%c0_44, %c0_45] : memref<72x32xf32, #tpu.memory_space<vmem>>, vector<72x32xf32>
    %cst_46 = arith.constant dense<0.000000e+00> : vector<72x256xf32>
    %72 = tpu.matmul %71, %70, %cst_46 {dimension_numbers = #tpu.dot_dimension_numbers<[1], [0], [0], [1], [0, 0, 1, 1], [], []>} : vector<72x32xf32>, vector<32x256xf32>, vector<72x256xf32> -> vector<72x256xf32>
    %73 = vector.extract_strided_slice %72 {offsets = [32, 0], sizes = [8, 256], strides = [1, 1]} : vector<72x256xf32> to vector<8x256xf32>
    %74 = vector.extract_strided_slice %72 {offsets = [0, 0], sizes = [8, 256], strides = [1, 1]} : vector<72x256xf32> to vector<8x256xf32>
    %c17_i32_47 = arith.constant 17 : i32
    %75 = tpu.dynamic_rotate %74 by %c17_i32_47 dim 1 : vector<8x256xf32>, i32 -> vector<8x256xf32>
    %c0_48 = arith.constant 0 : index
    %c0_49 = arith.constant 0 : index
    %c0_50 = arith.constant 0 : index
    %76 = vector.load %arg3[%c0_48, %c0_49, %c0_50] : memref<9x1x256xf32, #tpu.memory_space<vmem>>, vector<1x1x256xf32>
    %77 = vector.shape_cast %76 : vector<1x1x256xf32> to vector<1x256xf32>
    %78 = vector.broadcast %77 : vector<1x256xf32> to vector<8x256xf32>
    %79 = arith.mulf %75, %78 : vector<8x256xf32>
    %80 = arith.addf %73, %79 : vector<8x256xf32>
    %81 = vector.extract_strided_slice %72 {offsets = [8, 0], sizes = [8, 256], strides = [1, 1]} : vector<72x256xf32> to vector<8x256xf32>
    %c16_i32_51 = arith.constant 16 : i32
    %82 = tpu.dynamic_rotate %81 by %c16_i32_51 dim 1 : vector<8x256xf32>, i32 -> vector<8x256xf32>
    %c1_52 = arith.constant 1 : index
    %c0_53 = arith.constant 0 : index
    %c0_54 = arith.constant 0 : index
    %83 = vector.load %arg3[%c1_52, %c0_53, %c0_54] : memref<9x1x256xf32, #tpu.memory_space<vmem>>, vector<1x1x256xf32>
    %84 = vector.shape_cast %83 : vector<1x1x256xf32> to vector<1x256xf32>
    %85 = vector.broadcast %84 : vector<1x256xf32> to vector<8x256xf32>
    %86 = arith.mulf %82, %85 : vector<8x256xf32>
    %87 = arith.addf %80, %86 : vector<8x256xf32>
    %88 = vector.extract_strided_slice %72 {offsets = [16, 0], sizes = [8, 256], strides = [1, 1]} : vector<72x256xf32> to vector<8x256xf32>
    %c15_i32_55 = arith.constant 15 : i32
    %89 = tpu.dynamic_rotate %88 by %c15_i32_55 dim 1 : vector<8x256xf32>, i32 -> vector<8x256xf32>
    %c2_56 = arith.constant 2 : index
    %c0_57 = arith.constant 0 : index
    %c0_58 = arith.constant 0 : index
    %90 = vector.load %arg3[%c2_56, %c0_57, %c0_58] : memref<9x1x256xf32, #tpu.memory_space<vmem>>, vector<1x1x256xf32>
    %91 = vector.shape_cast %90 : vector<1x1x256xf32> to vector<1x256xf32>
    %92 = vector.broadcast %91 : vector<1x256xf32> to vector<8x256xf32>
    %93 = arith.mulf %89, %92 : vector<8x256xf32>
    %94 = arith.addf %87, %93 : vector<8x256xf32>
    %95 = vector.extract_strided_slice %72 {offsets = [24, 0], sizes = [8, 256], strides = [1, 1]} : vector<72x256xf32> to vector<8x256xf32>
    %c1_i32_59 = arith.constant 1 : i32
    %96 = tpu.dynamic_rotate %95 by %c1_i32_59 dim 1 : vector<8x256xf32>, i32 -> vector<8x256xf32>
    %c3_60 = arith.constant 3 : index
    %c0_61 = arith.constant 0 : index
    %c0_62 = arith.constant 0 : index
    %97 = vector.load %arg3[%c3_60, %c0_61, %c0_62] : memref<9x1x256xf32, #tpu.memory_space<vmem>>, vector<1x1x256xf32>
    %98 = vector.shape_cast %97 : vector<1x1x256xf32> to vector<1x256xf32>
    %99 = vector.broadcast %98 : vector<1x256xf32> to vector<8x256xf32>
    %100 = arith.mulf %96, %99 : vector<8x256xf32>
    %101 = arith.addf %94, %100 : vector<8x256xf32>
    %102 = vector.extract_strided_slice %72 {offsets = [40, 0], sizes = [8, 256], strides = [1, 1]} : vector<72x256xf32> to vector<8x256xf32>
    %c255_i32_63 = arith.constant 255 : i32
    %103 = tpu.dynamic_rotate %102 by %c255_i32_63 dim 1 : vector<8x256xf32>, i32 -> vector<8x256xf32>
    %c5_64 = arith.constant 5 : index
    %c0_65 = arith.constant 0 : index
    %c0_66 = arith.constant 0 : index
    %104 = vector.load %arg3[%c5_64, %c0_65, %c0_66] : memref<9x1x256xf32, #tpu.memory_space<vmem>>, vector<1x1x256xf32>
    %105 = vector.shape_cast %104 : vector<1x1x256xf32> to vector<1x256xf32>
    %106 = vector.broadcast %105 : vector<1x256xf32> to vector<8x256xf32>
    %107 = arith.mulf %103, %106 : vector<8x256xf32>
    %108 = arith.addf %101, %107 : vector<8x256xf32>
    %109 = vector.extract_strided_slice %72 {offsets = [48, 0], sizes = [8, 256], strides = [1, 1]} : vector<72x256xf32> to vector<8x256xf32>
    %c241_i32_67 = arith.constant 241 : i32
    %110 = tpu.dynamic_rotate %109 by %c241_i32_67 dim 1 : vector<8x256xf32>, i32 -> vector<8x256xf32>
    %c6_68 = arith.constant 6 : index
    %c0_69 = arith.constant 0 : index
    %c0_70 = arith.constant 0 : index
    %111 = vector.load %arg3[%c6_68, %c0_69, %c0_70] : memref<9x1x256xf32, #tpu.memory_space<vmem>>, vector<1x1x256xf32>
    %112 = vector.shape_cast %111 : vector<1x1x256xf32> to vector<1x256xf32>
    %113 = vector.broadcast %112 : vector<1x256xf32> to vector<8x256xf32>
    %114 = arith.mulf %110, %113 : vector<8x256xf32>
    %115 = arith.addf %108, %114 : vector<8x256xf32>
    %116 = vector.extract_strided_slice %72 {offsets = [56, 0], sizes = [8, 256], strides = [1, 1]} : vector<72x256xf32> to vector<8x256xf32>
    %c240_i32_71 = arith.constant 240 : i32
    %117 = tpu.dynamic_rotate %116 by %c240_i32_71 dim 1 : vector<8x256xf32>, i32 -> vector<8x256xf32>
    %c7_72 = arith.constant 7 : index
    %c0_73 = arith.constant 0 : index
    %c0_74 = arith.constant 0 : index
    %118 = vector.load %arg3[%c7_72, %c0_73, %c0_74] : memref<9x1x256xf32, #tpu.memory_space<vmem>>, vector<1x1x256xf32>
    %119 = vector.shape_cast %118 : vector<1x1x256xf32> to vector<1x256xf32>
    %120 = vector.broadcast %119 : vector<1x256xf32> to vector<8x256xf32>
    %121 = arith.mulf %117, %120 : vector<8x256xf32>
    %122 = arith.addf %115, %121 : vector<8x256xf32>
    %123 = vector.extract_strided_slice %72 {offsets = [64, 0], sizes = [8, 256], strides = [1, 1]} : vector<72x256xf32> to vector<8x256xf32>
    %c239_i32_75 = arith.constant 239 : i32
    %124 = tpu.dynamic_rotate %123 by %c239_i32_75 dim 1 : vector<8x256xf32>, i32 -> vector<8x256xf32>
    %c8_76 = arith.constant 8 : index
    %c0_77 = arith.constant 0 : index
    %c0_78 = arith.constant 0 : index
    %125 = vector.load %arg3[%c8_76, %c0_77, %c0_78] : memref<9x1x256xf32, #tpu.memory_space<vmem>>, vector<1x1x256xf32>
    %126 = vector.shape_cast %125 : vector<1x1x256xf32> to vector<1x256xf32>
    %127 = vector.broadcast %126 : vector<1x256xf32> to vector<8x256xf32>
    %128 = arith.mulf %124, %127 : vector<8x256xf32>
    %129 = arith.addf %122, %128 : vector<8x256xf32>
    %130 = vector.extract_strided_slice %129 {offsets = [0, 0], sizes = [4, 256], strides = [1, 1]} : vector<8x256xf32> to vector<4x256xf32>
    %c0_79 = arith.constant 0 : index
    %c0_80 = arith.constant 0 : index
    %131 = vector.load %arg8[%c0_79, %c0_80] : memref<4x1xf32, #tpu.memory_space<vmem>>, vector<4x1xf32>
    %132 = vector.broadcast %131 : vector<4x1xf32> to vector<4x256xf32>
    %133 = arith.addf %130, %132 : vector<4x256xf32>
    %c0_81 = arith.constant 0 : index
    %c0_82 = arith.constant 0 : index
    %134 = vector.load %arg9[%c0_81, %c0_82] : memref<4x256xf32, #tpu.memory_space<vmem>>, vector<4x256xf32>
    tpu.vector_store %arg9[%c0_81, %c0_82], %133 {strides = array<i32>} : memref<4x256xf32, #tpu.memory_space<vmem>>, vector<4x256xf32>,
    return
  }
  func.func @transform_0(%arg0: i32) -> (i32, i32) {
    %c0_i32 = arith.constant 0 : i32
    %c0_i32_0 = arith.constant 0 : i32
    return %c0_i32, %arg0 : i32, i32
  }
  func.func @transform_1(%arg0: i32) -> (i32, i32) {
    %c0_i32 = arith.constant 0 : i32
    %c0_i32_0 = arith.constant 0 : i32
    return %c0_i32, %arg0 : i32, i32
  }
  func.func @transform_2(%arg0: i32) -> (i32, i32, i32) {
    %c0_i32 = arith.constant 0 : i32
    %c0_i32_0 = arith.constant 0 : i32
    %c0_i32_1 = arith.constant 0 : i32
    %c0_i32_2 = arith.constant 0 : i32
    return %c0_i32, %c0_i32_0, %c0_i32_1 : i32, i32, i32
  }
  func.func @transform_3(%arg0: i32) -> (i32, i32) {
    %c0_i32 = arith.constant 0 : i32
    %c0_i32_0 = arith.constant 0 : i32
    %c0_i32_1 = arith.constant 0 : i32
    return %c0_i32, %c0_i32_0 : i32, i32
  }
  func.func @transform_4(%arg0: i32) -> (i32, i32) {
    %c0_i32 = arith.constant 0 : i32
    %c0_i32_0 = arith.constant 0 : i32
    %c0_i32_1 = arith.constant 0 : i32
    return %c0_i32, %c0_i32_0 : i32, i32
  }
  func.func @transform_5(%arg0: i32) -> (i32, i32) {
    %c0_i32 = arith.constant 0 : i32
    %c0_i32_0 = arith.constant 0 : i32
    %c0_i32_1 = arith.constant 0 : i32
    return %c0_i32, %c0_i32_0 : i32, i32
  }
  func.func @transform_6(%arg0: i32) -> (i32, i32) {
    %c0_i32 = arith.constant 0 : i32
    %c0_i32_0 = arith.constant 0 : i32
    %c0_i32_1 = arith.constant 0 : i32
    return %c0_i32, %c0_i32_0 : i32, i32
  }
  func.func @transform_7(%arg0: i32) -> (i32, i32) {
    %c0_i32 = arith.constant 0 : i32
    %c0_i32_0 = arith.constant 0 : i32
    %c0_i32_1 = arith.constant 0 : i32
    return %c0_i32, %c0_i32_0 : i32, i32
  }
  func.func @transform_8(%arg0: i32) -> (i32, i32) {
    %c0_i32 = arith.constant 0 : i32
    %c0_i32_0 = arith.constant 0 : i32
    return %c0_i32, %arg0 : i32, i32
  }
}

</mosaic_0001>

<bundles_post_ra>
// kernel: tpu_custom_call.1
= control target key start
LH: loop header
LB: loop body
LE: loop exit
PB: predicated region body
PF: predicated region fallthrough
CT: control target
= control target key end

     0   :  { %13 = vsyncpa [#allocation4], 0  ;;  %s1866_s0 = inlined_call_operand.vmem [shape: f32[4,512], index: 0, kind: input, shape index: {}]   ;;  %s1867_s1 = inlined_call_operand.vmem [shape: f32[3,512], index: 1, kind: input, shape index: {}]   ;;  %s1868_s2 = inlined_call_operand.vmem [shape: f32[9,1,256], index: 2, kind: input, shape index: {}]   ;;  %s1869_s3 = inlined_call_operand.vmem [shape: f32[32,80], index: 3, kind: input, shape index: {}]   ;;  %s1870_s4 = inlined_call_operand.vmem [shape: f32[32,32], index: 4, kind: input, shape index: {}]   ;;  %s1871_s5 = inlined_call_operand.vmem [shape: f32[32,1], index: 5, kind: input, shape index: {}]   ;;  %s1872_s6 = inlined_call_operand.vmem [shape: f32[72,32], index: 6, kind: input, shape index: {}]   ;;  %s1873_s7 = inlined_call_operand.vmem [shape: f32[4,1], index: 7, kind: input, shape index: {}]   ;;  %s1874_s8 = inlined_call_operand.hbm [shape: f32[4,512], index: 8, kind: output, shape index: {}]  }
   0x1   :  { %15 = vsyncpa [#allocation4 + $0x1], 0  ;;  %s1479_s27 = smov 0   ;;  %s1481_s28 = smov 0  }
   0x2   :  { %s1483_s29 = smov 0   ;;  %s1485_s30 = smov 0  }
   0x3 LB: > { %s1500_s9 = sadd.s32 4294967295, %s1420_s30   ;;  %s1247_s10 = sadd.s32 4294967294, %s1420_s30   ;;  %s1420_s30 = sphi %s1485_s30, %s1889_s30   ;;  %s1416_s29 = sphi %s1483_s29, %s1888_s29   ;;  %s1412_s28 = sphi %s1481_s28, %s1887_s28   ;;  %s1408_s27 = sphi %s1479_s27, %s1886_s27  }
   0x4   : > { %s1504_s11 = sadd.s32 1, %s1420_s30   ;;  %s206_s12 = sadd.s32 1, %s1416_s29 }
   0x5   : > { %s203_s13 = ssub.s32 %s1420_s30, %s1504_s11  ;;  %p216_p0 = scmp.ne.s32.totalorder %s1416_s29, %s1412_s28 }
   0x6   : > { %p204_p1 = scmp.eq.s32.totalorder %s203_s13, 0  ;;  %p217_p2 = scmp.eq.s32.totalorder %s1500_s9, 1 }
   0x7   : > { %p222_p3 = scmp.ne.s32.totalorder %s1412_s28, %s1408_s27  ;;  %p223_p4 = scmp.eq.s32.totalorder %s1247_s10, 1 }
   0x8   : > { %s1515_s14 = scalar_select %p204_p1, %s1416_s29, %s206_s12  }
   0x9   : > { %p1517_p5 = por %p217_p2, %p216_p0  ;;  %p1521_p6 = por %p223_p4, %p222_p3 }
   0xa   : > { %p1250_p7 = scmp.ge.s32.totalorder %s1420_s30, 1  ;;  %p277_p8 = scmp.lt.s32.totalorder %s1420_s30, 3 }
   0xc   : > { %p278_p9 = pnand %p1250_p7, %p277_p8 }
   0xd   : > { %s1252_s17 = sshll.u32 (!%p278_p9), %s1500_s9, 1  ;;  %s1877_s25 = smov (!%p278_p9), 112  }
   0xe   : > { %281 = sbr.rel (%p278_p9) target bundleno = 978 (0x3d2), region = 52  ;;  %p317_p10 = scmp.lt.s32.totalorder (!%p278_p9), %s1252_s17, 3 }
   0xf   : > { %s1875_s26 = smov (!%p278_p9), 111   ;;  %s1879_s10 = smov (!%p278_p9), 113  }
  0x10   : > { %s1426_s12 = smov (!%p278_p9), 127   ;;  %s1427_s13 = smov (!%p278_p9), 1  }
  0x11   : > { %s1431_s19 = smov (!%p278_p9), 17   ;;  %s313_s22 = sand.u32 (!%p278_p9), 1, %s1412_s28  }
  0x12   : > { %s1251_s23 = sshll.u32 (!%p278_p9), %s313_s22, 3 }
  0x13   : > { %v347_v0 = vlaneseq  ;;  %s1891_s17 = smov (!%p317_p10, %s1252_s17), 3  ;;  %v1422_v2 = vmov 1.0   ;;  %vm337_vm1 = vcmask 1043456   ;;  %vm340_vm2 = vcmask 1046528   ;;  %v1262_v15 = vld [vmem:[%s1868_s2 + $0x10] sm:$0x3] }
  0x14   : > { %s1253_s18 = sshll.u32 %s1891_s17, 2  ;;  %v1428_v11 = vmov 0.0   ;;  %s1429_s17 = smov 15   ;;  %v1261_v18 = vld [vmem:[%s1868_s2 + $0xe] sm:$0x3]  ;;  %vm569_vm11 = vcmask 654336  }
  0x15   : > { %v355_v1 = vshrl.u32 %v347_v0, 7  ;;  %s320_s21 = scalar_lea.vmem %s1866_s0, %s1253_s18  ;;  %s326_s24 = scalar_lea.vmem %s1867_s1, %s1253_s18  ;;  %646 = vmatprep.mubr.f32.mxu0 %v1428_v11  ;;  %784 = vmatprep.mubr.f32.mxu1 %v1428_v11  ;;  %v1560_v12 = vand.u32 127, %v347_v0  ;;  %v1260_v21 = vld [vmem:[%s1868_s2 + $0xc] sm:$0x3]  ;;  %v1259_v34 = vld [vmem:[%s1868_s2 + $0xa] sm:$0x3] }
  0x16   : > { %v329_v3 = vld [vmem:[%s320_s21] sm:$0xff]  ;;  %s1430_s18 = smov 16   ;;  %vm707_vm12 = vcmask 261120  }
  0x17   : > { %vm540_vm0 = vcmp.eq.s32.totalorder %v355_v1, 0  ;;  %v330_v4 = vld [vmem:[%s326_s24] sm:$0x77]  ;;  %v332_v6 = vcombine.high %v329_v3, %v329_v3  ;;  %v1562_v13 = vsub.s32 0, %v355_v1  ;;  %v1564_v14 = vsub.s32 1, %v355_v1  ;;  %s1293_s24 = sshll.u32 %s1500_s9, 7 }
  0x18   : > { %1294 = vmatprep.subr.msk.mxu0 %vm540_vm0, %v1422_v2  ;;  %v335_v5 = vcombine.low %v330_v4, %v330_v4  ;;  %vm494_vm3 = vcmp.lt.s32.totalorder %v1560_v12, 112  ;;  %vm518_vm4 = vcmp.lt.s32.totalorder %v1560_v12, 111  ;;  %vm470_vm5 = vcmp.lt.s32.totalorder %v1560_v12, 113  ;;  %v1258_v45 = vld [vmem:[%s1868_s2 + $0x6] sm:$0x3] }
  0x19   : > { %1295 = vmatpush1.msk.msra.mxu0 %vm540_vm0, %v1422_v2  ;;  %v1536_v8 = vsel %vm337_vm1, %v332_v6, %v330_v4  ;;  %v527_v19 = vrot.slane %v1262_v15, %v1562_v13  ;;  %v531_v20 = vrot.slane %v1262_v15, %v1564_v14  ;;  %v503_v22 = vrot.slane %v1261_v18, %v1562_v13  ;;  %v1257_v54 = vld [vmem:[%s1868_s2 + $0x4] sm:$0x3]  ;;  %v1256_v63 = vld [vmem:[%s1868_s2 + $0x2] sm:$0x3] }
  0x1a   : > { %v1534_v7 = vsel %vm337_vm1, %v329_v3, %v335_v5  ;;  %v342_v10 = vsel %vm340_vm2, %v1536_v8, 0.0  ;;  %v507_v23 = vrot.slane %v1261_v18, %v1564_v14  ;;  %v479_v29 = vrot.slane %v1260_v21, %v1562_v13 }
  0x1b   : > { %v341_v9 = vsel %vm340_vm2, %v1534_v7, 0.0  ;;  %v483_v33 = vrot.slane %v1260_v21, %v1564_v14  ;;  %vm446_vm6 = vcmp.lt.s32.totalorder %v1560_v12, 127  ;;  %v455_v43 = vrot.slane %v1259_v34, %v1562_v13 }
  0x1c   : > { %490 = vrot.lane.b32.xlu1 %v341_v9, %s1877_s25  ;;  %514 = vrot.lane.b32.xlu0 %v341_v9, %s1875_s26  ;;  %v459_v44 = vrot.slane %v1259_v34, %v1564_v14  ;;  %vm420_vm7 = vcmp.lt.s32.totalorder %v1560_v12, 1  ;;  %v429_v52 = vrot.slane %v1258_v45, %v1562_v13  ;;  %v433_v53 = vrot.slane %v1258_v45, %v1564_v14  ;;  %v683_v34 = vld [vmem:[%s1871_s5] sm:$0xff] }
  0x1d   : > { %vm396_vm8 = vcmp.lt.s32.totalorder %v1560_v12, 15  ;;  %v405_v61 = vrot.slane %v1257_v54, %v1562_v13  ;;  %v409_v62 = vrot.slane %v1257_v54, %v1564_v14  ;;  %vm372_vm9 = vcmp.lt.s32.totalorder %v1560_v12, 16  ;;  %v681_v54 = vld [vmem:[%s1870_s4 + $0x10] sm:$0xff] }
  0x1e   : > { %v381_v6 = vrot.slane %v1256_v63, %v1562_v13  ;;  %vm349_vm10 = vcmp.lt.s32.totalorder %v1560_v12, 17 }
  0x20   : > { %492 = vrot.lane.b32.xlu1 %v342_v10, %s1877_s25  ;;  %516 = vrot.lane.b32.xlu0 %v342_v10, %s1875_s26  ;;  %s315_s25 = scalar_lea.vmem [#allocation3], %s1251_s23  ;;  %s1162_s26 = scalar_lea.sflag [#allocation4], %s313_s22 }
  0x24   : > { %468 = vrot.lane.b32.xlu1 %v342_v10, %s1879_s10  ;;  %466 = vrot.lane.b32.xlu0 %v341_v9, %s1879_s10  ;;  %s1176_s10 = sshll.u32 %s315_s25, 4  ;;  %s1177_s10 = int_to_ptr.vmem [resolvable:$true] %s1176_s10 }
  0x28   : > { %444 = vrot.lane.b32.xlu1 %v342_v10, %s1426_s12  ;;  %442 = vrot.lane.b32.xlu0 %v341_v9, %s1426_s12 }
  0x2c   : > { %418 = vrot.lane.b32.xlu1 %v342_v10, %s1427_s13  ;;  %416 = vrot.lane.b32.xlu0 %v341_v9, %s1427_s13 }
  0x30   : > { %394 = vrot.lane.b32.xlu1 %v342_v10, %s1429_s17  ;;  %392 = vrot.lane.b32.xlu0 %v341_v9, %s1429_s17 }
  0x34   : > { %370 = vrot.lane.b32.xlu1 %v342_v10, %s1430_s18  ;;  %368 = vrot.lane.b32.xlu0 %v341_v9, %s1430_s18 }
  0x38   : > { %345 = vrot.lane.b32.xlu1 %v342_v10, %s1431_s19  ;;  %343 = vrot.lane.b32.xlu0 %v341_v9, %s1431_s19 }
  0x8e   : > { %v491_v16 = vpop.permute.xlu1 %490  ;;  %v515_v17 = vpop.permute.xlu0 %514 }
  0x92   : > { %v493_v24 = vpop.permute.xlu1 %492  ;;  %v517_v25 = vpop.permute.xlu0 %516 }
  0x93   : > { %v496_v26 = vsel %vm494_vm3, %v493_v24, %v491_v16  ;;  %v519_v27 = vsel %vm518_vm4, %v515_v17, %v517_v25  ;;  %v520_v28 = vsel %vm518_vm4, %v517_v25, %v515_v17  ;;  %v495_v30 = vsel %vm494_vm3, %v491_v16, %v493_v24 }
  0x94   : > { %v534_v31 = vmul.f32 %v527_v19, %v519_v27  ;;  %v535_v32 = vmul.f32 %v531_v20, %v520_v28  ;;  %v511_v35 = vmul.f32 %v507_v23, %v496_v26  ;;  %v510_v38 = vmul.f32 %v503_v22, %v495_v30  ;;  %v545_v27 = vld [vmem:[%s1869_s3] sm:$0xff]  ;;  %v546_v28 = vld [vmem:[%s1869_s3 + $0x8] sm:$0xff]  ;;  %v548_v30 = vld [vmem:[%s1869_s3 + $0x18] sm:$0xff] }
  0x96   : > { %v469_v36 = vpop.permute.xlu1 %468  ;;  %596 = vmatprep.subr.mxu0 %v535_v32  ;;  %v467_v37 = vpop.permute.xlu0 %466  ;;  %v685_v32 = vld [vmem:[%s1871_s5 + $0x10] sm:$0xff] }
  0x97   : > { %v471_v39 = vsel %vm470_vm5, %v467_v37, %v469_v36  ;;  %v472_v40 = vsel %vm470_vm5, %v469_v36, %v467_v37  ;;  %597 = vmatpush1.msra.mxu0 %v534_v31  ;;  %v686_v31 = vld [vmem:[%s1871_s5 + $0x18] sm:$0xff] }
  0x98   : > { %v486_v41 = vmul.f32 %v479_v29, %v471_v39  ;;  %v487_v42 = vmul.f32 %v483_v33, %v472_v40  ;;  %598 = vmatprep.subr.mxu0 %v511_v35  ;;  %v547_v29 = vld [vmem:[%s1869_s3 + $0x10] sm:$0xff]  ;;  %v1432_v33 = vmov 0   ;;  %v684_v35 = vld [vmem:[%s1871_s5 + $0x8] sm:$0xff] }
  0x99   : > { %599 = vmatpush1.msra.mxu0 %v510_v38  ;;  %1356 = vset.pattern.permute.xlu0 %v1432_v33 }
  0x9a   : > { %v445_v46 = vpop.permute.xlu1 %444  ;;  %600 = vmatprep.subr.mxu0 %v487_v42  ;;  %v443_v47 = vpop.permute.xlu0 %442  ;;  %1357 = vset.pattern.permute.xlu1 %v1432_v33 }
  0x9b   : > { %v447_v48 = vsel %vm446_vm6, %v443_v47, %v445_v46  ;;  %v448_v49 = vsel %vm446_vm6, %v445_v46, %v443_v47  ;;  %601 = vmatpush1.msra.mxu0 %v486_v41  ;;  %704 = vperm.xlu0 %1356, %v686_v31   ;;  %v824_v31 = vld [vmem:[%s1872_s6 + $0x38] sm:$0xff] }
  0x9c   : > { %v462_v50 = vmul.f32 %v455_v43, %v447_v48  ;;  %v463_v51 = vmul.f32 %v459_v44, %v448_v49  ;;  %699 = vperm.xlu1 %1357, %v685_v32   ;;  %v825_v32 = vld [vmem:[%s1872_s6 + $0x40] sm:$0xff] }
  0x9e   : > { %v419_v55 = vpop.permute.xlu1 %418  ;;  %602 = vmatprep.subr.mxu0 %v463_v51  ;;  %v417_v56 = vpop.permute.xlu0 %416 }
  0x9f   : > { %v421_v57 = vsel %vm420_vm7, %v417_v56, %v419_v55  ;;  %v422_v58 = vsel %vm420_vm7, %v419_v55, %v417_v56  ;;  %603 = vmatpush1.msra.mxu0 %v462_v50  ;;  %689 = vperm.xlu0 %1356, %v683_v34   ;;  %v682_v55 = vld [vmem:[%s1870_s4 + $0x18] sm:$0xff] }
  0xa0   : > { %v436_v59 = vmul.f32 %v429_v52, %v422_v58  ;;  %v437_v60 = vmul.f32 %v433_v53, %v421_v57  ;;  %1296 = vmatprep.subr.msk.mxu0 %vm340_vm2, %v1536_v8  ;;  %v352_v8 = vld [vmem:[%s1868_s2] sm:$0x3]  ;;  %694 = vperm.xlu1 %1357, %v684_v35   ;;  %v680_v53 = vld [vmem:[%s1870_s4 + $0x8] sm:$0xff] }
  0xa1   : > { %1297 = vmatpush1.msk.msra.mxu0 %vm340_vm2, %v1534_v7  ;;  %v385_v7 = vrot.slane %v1256_v63, %v1564_v14  ;;  %v357_v19 = vrot.slane %v352_v8, %v1562_v13  ;;  %v361_v20 = vrot.slane %v352_v8, %v1564_v14  ;;  %v679_v52 = vld [vmem:[%s1870_s4] sm:$0xff] }
  0xa2   : > { %v395_v0 = vpop.permute.xlu1 %394  ;;  %606 = vmatprep.subr.mxu0 %v437_v60  ;;  %v393_v1 = vpop.permute.xlu0 %392 }
  0xa3   : > { %v397_v2 = vsel %vm396_vm8, %v393_v1, %v395_v0  ;;  %v398_v3 = vsel %vm396_vm8, %v395_v0, %v393_v1  ;;  %607 = vmatpush1.msra.mxu0 %v436_v59 }
  0xa4   : > { %v412_v4 = vmul.f32 %v405_v61, %v398_v3  ;;  %v413_v5 = vmul.f32 %v409_v62, %v397_v2 }
  0xa6   : > { %v371_v9 = vpop.permute.xlu1 %370  ;;  %608 = vmatprep.subr.mxu0 %v413_v5  ;;  %v369_v10 = vpop.permute.xlu0 %368 }
  0xa7   : > { %v373_v15 = vsel %vm372_vm9, %v369_v10, %v371_v9  ;;  %v374_v16 = vsel %vm372_vm9, %v371_v9, %v369_v10  ;;  %609 = vmatpush1.msra.mxu0 %v412_v4 }
  0xa8   : > { %v388_v17 = vmul.f32 %v381_v6, %v374_v16  ;;  %v389_v18 = vmul.f32 %v385_v7, %v373_v15 }
  0xaa   : > { %v346_v21 = vpop.permute.xlu1 %345  ;;  %610 = vmatprep.subr.mxu0 %v389_v18  ;;  %v344_v22 = vpop.permute.xlu0 %343 }
  0xab   : > { %v350_v23 = vsel %vm349_vm10, %v344_v22, %v346_v21  ;;  %v351_v24 = vsel %vm349_vm10, %v346_v21, %v344_v22  ;;  %611 = vmatpush1.msra.mxu0 %v388_v17 }
  0xac   : > { %v364_v25 = vmul.f32 %v357_v19, %v351_v24  ;;  %v365_v26 = vmul.f32 %v361_v20, %v350_v23  ;;  %v817_v24 = vld [vmem:[%s1872_s6] sm:$0xff] }
  0xae   : > { %612 = vmatprep.subr.mxu0 %v365_v26  ;;  %v818_v26 = vld [vmem:[%s1872_s6 + $0x8] sm:$0xff] }
  0xaf   : > { %613 = vmatpush1.msra.mxu0 %v364_v25  ;;  %v820_v25 = vld [vmem:[%s1872_s6 + $0x18] sm:$0xff] }
  0xb0   : > { %1264 = vmatmul.mubr.msk.f32.vlgmr.msra.gmra.mxu0 %vm569_vm11, %v545_v27  ;;  %v821_v27 = vld [vmem:[%s1872_s6 + $0x20] sm:$0xff] }
  0xb1   : > { %652 = vmatprep.mubr.f32.mxu0 %v1428_v11 }
  0xb4   : > { %1265 = vmatmul.mubr.msk.f32.gmra.mxu0 %vm569_vm11, %v546_v28  ;;  %v819_v28 = vld [vmem:[%s1872_s6 + $0x10] sm:$0xff] }
  0xb5   : > { %658 = vmatprep.mubr.f32.mxu0 %v1428_v11 }
  0xb8   : > { %1266 = vmatmul.mubr.msk.f32.gmra.mxu0 %vm569_vm11, %v547_v29  ;;  %v822_v29 = vld [vmem:[%s1872_s6 + $0x28] sm:$0xff] }
  0xb9   : > { %664 = vmatprep.mubr.f32.mxu0 %v1428_v11 }
  0xbc   : > { %1267 = vmatmul.mubr.msk.f32.gmra.mxu0 %vm569_vm11, %v548_v30  ;;  %v823_v30 = vld [vmem:[%s1872_s6 + $0x30] sm:$0xff] }
  0xbd   : > { %917 = vmatprep.mubr.f32.mxu0 %v1428_v11 }
 0x116   : > { %v705_v63 = vpop.permute.xlu0 %704 }
 0x117   : > { %v700_v61 = vpop.permute.xlu1 %699 }
 0x11a   : > { %v690_v7 = vpop.permute.xlu0 %689 }
 0x11b   : > { %v695_v3 = vpop.permute.xlu1 %694 }
 0x170   : > { %v648_v36 = vpop.f32.mrf.mxu0 }
 0x171   : > { %v671_v51 = vmax.f32 %v648_v36, 0.0 }
 0x172   : > { %v650_v37 = vpop.f32.mrf.mxu0 }
 0x173   : > { %v672_v50 = vmax.f32 %v650_v37, 0.0 }
 0x174   : > { %v654_v38 = vpop.f32.mrf.mxu0 }
 0x175   : > { %v673_v49 = vmax.f32 %v654_v38, 0.0 }
 0x176   : > { %v656_v39 = vpop.f32.mrf.mxu0 }
 0x177   : > { %v674_v48 = vmax.f32 %v656_v39, 0.0 }
 0x178   : > { %v660_v40 = vpop.f32.mrf.mxu0 }
 0x179   : > { %v675_v47 = vmax.f32 %v660_v40, 0.0 }
 0x17a   : > { %v662_v41 = vpop.f32.mrf.mxu0 }
 0x17b   : > { %v676_v46 = vmax.f32 %v662_v41, 0.0 }
 0x17c   : > { %v666_v42 = vpop.f32.mrf.mxu0 }
 0x17d   : > { %v677_v45 = vmax.f32 %v666_v42, 0.0 }
 0x17e   : > { %v668_v43 = vpop.f32.mrf.mxu0 }
 0x17f   : > { %v678_v44 = vmax.f32 %v668_v43, 0.0 }
 0x181   : > { %744 = vmatprep.subr.mxu1 %v678_v44 }
 0x182   : > { %745 = vmatpush1.msra.mxu1 %v677_v45 }
 0x183   : > { %746 = vmatprep.subr.mxu1 %v676_v46 }
 0x184   : > { %747 = vmatpush1.msra.mxu1 %v675_v47 }
 0x185   : > { %748 = vmatprep.subr.mxu1 %v674_v48 }
 0x186   : > { %749 = vmatpush1.msra.mxu1 %v673_v49 }
 0x187   : > { %750 = vmatprep.subr.mxu1 %v672_v50  ;;  %v1148_v50 = vld [vmem:[%s1873_s7] sm:$0xf] }
 0x188   : > { %751 = vmatpush1.msra.mxu1 %v671_v51 }
 0x189   : > { %1268 = vmatmul.mubr.msk.f32.vlgmr.msra.gmra.mxu1 %vm707_vm12, %v679_v52 }
 0x18a   : > { %790 = vmatprep.mubr.f32.mxu1 %v1428_v11 }
 0x18d   : > { %1269 = vmatmul.mubr.msk.f32.gmra.mxu1 %vm707_vm12, %v680_v53 }
 0x18e   : > { %796 = vmatprep.mubr.f32.mxu1 %v1428_v11 }
 0x191   : > { %1270 = vmatmul.mubr.msk.f32.gmra.mxu1 %vm707_vm12, %v681_v54 }
 0x192   : > { %802 = vmatprep.mubr.f32.mxu1 %v1428_v11 }
 0x195   : > { %1271 = vmatmul.mubr.msk.f32.gmra.mxu1 %vm707_vm12, %v682_v55 }
 0x196   : > { %935 = vmatprep.mubr.f32.mxu1 %v1428_v11 }
 0x249   : > { %v786_v56 = vpop.f32.mrf.mxu1 }
 0x24a   : > { %v787_v18 = vadd.f32 %v786_v56, %v690_v7 }
 0x24b   : > { %v788_v57 = vpop.f32.mrf.mxu1 }
 0x24c   : > { %v789_v16 = vadd.f32 %v788_v57, %v690_v7  ;;  %v809_v23 = vmax.f32 %v787_v18, 0.0  ;;  %v978_v57 = vld [vmem:[%s1868_s2] sm:$0x3] }
 0x24d   : > { %v792_v58 = vpop.f32.mrf.mxu1 }
 0x24e   : > { %v793_v10 = vadd.f32 %v792_v58, %v695_v3  ;;  %v810_v22 = vmax.f32 %v789_v16, 0.0 }
 0x24f   : > { %v794_v59 = vpop.f32.mrf.mxu1 }
 0x250   : > { %v795_v8 = vadd.f32 %v794_v59, %v695_v3  ;;  %v811_v21 = vmax.f32 %v793_v10, 0.0  ;;  %v1281_v59 = vld [vmem:[%s1868_s2 + $0x2] sm:$0x3] }
 0x251   : > { %v798_v60 = vpop.f32.mrf.mxu1  ;;  %v1009_v3 = vrot.slane %v1281_v59, %v1564_v14 }
 0x252   : > { %v799_v6 = vadd.f32 %v798_v60, %v700_v61  ;;  %v812_v20 = vmax.f32 %v795_v8, 0.0  ;;  %v983_v60 = vrot.slane %v978_v57, %v1562_v13 }
 0x253   : > { %v800_v62 = vpop.f32.mrf.mxu1 }
 0x254   : > { %v801_v4 = vadd.f32 %v800_v62, %v700_v61  ;;  %v813_v19 = vmax.f32 %v799_v6, 0.0  ;;  %v987_v61 = vrot.slane %v978_v57, %v1564_v14 }
 0x255   : > { %v804_v0 = vpop.f32.mrf.mxu1 }
 0x256   : > { %v805_v1 = vadd.f32 %v804_v0, %v705_v63  ;;  %v814_v17 = vmax.f32 %v801_v4, 0.0 }
 0x257   : > { %v806_v2 = vpop.f32.mrf.mxu1 }
 0x258   : > { %v807_v5 = vadd.f32 %v806_v2, %v705_v63  ;;  %v815_v15 = vmax.f32 %v805_v1, 0.0  ;;  %v1282_v1 = vld [vmem:[%s1868_s2 + $0x4] sm:$0x3]  ;;  %v1005_v2 = vrot.slane %v1281_v59, %v1562_v13 }
 0x259   : > { %v1031_v10 = vrot.slane %v1282_v1, %v1564_v14 }
 0x25a   : > { %v816_v9 = vmax.f32 %v807_v5, 0.0 }
 0x25c   : > { %877 = vmatprep.subr.mxu0 %v816_v9  ;;  %1298 = vmatprep.subr.mxu1 %v816_v9  ;;  %v1027_v9 = vrot.slane %v1282_v1, %v1562_v13 }
 0x25d   : > { %878 = vmatpush1.msra.mxu0 %v815_v15  ;;  %1302 = vmatpush1.msra.mxu1 %v815_v15 }
 0x25e   : > { %879 = vmatprep.subr.mxu0 %v814_v17  ;;  %1299 = vmatprep.subr.mxu1 %v814_v17 }
 0x25f   : > { %880 = vmatpush1.msra.mxu0 %v813_v19  ;;  %1303 = vmatpush1.msra.mxu1 %v813_v19 }
 0x260   : > { %881 = vmatprep.subr.mxu0 %v812_v20  ;;  %1300 = vmatprep.subr.mxu1 %v812_v20 }
 0x261   : > { %882 = vmatpush1.msra.mxu0 %v811_v21  ;;  %1304 = vmatpush1.msra.mxu1 %v811_v21  ;;  %v1283_v21 = vld [vmem:[%s1868_s2 + $0x6] sm:$0x3] }
 0x262   : > { %883 = vmatprep.subr.mxu0 %v810_v22  ;;  %1301 = vmatprep.subr.mxu1 %v810_v22 }
 0x263   : > { %884 = vmatpush1.msra.mxu0 %v809_v23  ;;  %1305 = vmatpush1.msra.mxu1 %v809_v23 }
 0x264   : > { %1272 = vmatmul.mubr.msk.f32.vlgmr.msra.gmra.mxu0 %vm707_vm12, %v817_v24  ;;  %1275 = vmatmul.mubr.msk.f32.vlgmr.msra.gmra.mxu1 %vm707_vm12, %v820_v25 }
 0x265   : > { %923 = vmatprep.mubr.f32.mxu0 %v1428_v11  ;;  %941 = vmatprep.mubr.f32.mxu1 %v1428_v11 }
 0x268   : > { %1273 = vmatmul.mubr.msk.f32.gmra.mxu0 %vm707_vm12, %v818_v26  ;;  %1276 = vmatmul.mubr.msk.f32.gmra.mxu1 %vm707_vm12, %v821_v27  ;;  %v1284_v27 = vld [vmem:[%s1868_s2 + $0xa] sm:$0x3] }
 0x269   : > { %929 = vmatprep.mubr.f32.mxu0 %v1428_v11  ;;  %947 = vmatprep.mubr.f32.mxu1 %v1428_v11 }
 0x26c   : > { %1274 = vmatmul.mubr.msk.f32.gmra.mxu0 %vm707_vm12, %v819_v28  ;;  %1277 = vmatmul.mubr.msk.f32.gmra.mxu1 %vm707_vm12, %v822_v29  ;;  %v1049_v28 = vrot.slane %v1283_v21, %v1562_v13  ;;  %v1053_v29 = vrot.slane %v1283_v21, %v1564_v14 }
 0x26d   : > { %953 = vmatprep.mubr.f32.mxu1 %v1428_v11 }
 0x270   : > { %1278 = vmatmul.mubr.msk.f32.gmra.mxu1 %vm707_vm12, %v823_v30 }
 0x271   : > { %959 = vmatprep.mubr.f32.mxu1 %v1428_v11 }
 0x274   : > { %1279 = vmatmul.mubr.msk.f32.gmra.mxu1 %vm707_vm12, %v824_v31 }
 0x275   : > { %965 = vmatprep.mubr.f32.mxu1 %v1428_v11 }
 0x278   : > { %1280 = vmatmul.mubr.msk.f32.gmra.mxu1 %vm707_vm12, %v825_v32 }
 0x324   : > { %v919_v33 = vpop.f32.mrf.mxu0  ;;  %v937_v34 = vpop.f32.mrf.mxu1 }
 0x325   : > { %972 = vrot.lane.b32.xlu1 %v919_v33, %s1431_s19 }
 0x326   : > { %v921_v35 = vpop.f32.mrf.mxu0  ;;  %v939_v36 = vpop.f32.mrf.mxu1 }
 0x327   : > { %974 = vrot.lane.b32.xlu0 %v921_v35, %s1431_s19  ;;  %s1884_s19 = smov 112  }
 0x328   : > { %v925_v37 = vpop.f32.mrf.mxu0  ;;  %v943_v38 = vpop.f32.mrf.mxu1 }
 0x329   : > { %1038 = vrot.lane.b32.xlu1 %v937_v34, %s1427_s13  ;;  %v1285_v34 = vld [vmem:[%s1868_s2 + $0xc] sm:$0x3] }
 0x32a   : > { %v927_v39 = vpop.f32.mrf.mxu0  ;;  %v945_v11 = vpop.f32.mrf.mxu1 }
 0x32b   : > { %1040 = vrot.lane.b32.xlu0 %v939_v36, %s1427_s13  ;;  %s1883_s13 = smov 113  }
 0x32c   : > { %v949_v40 = vpop.f32.mrf.mxu1  ;;  %v931_v41 = vpop.f32.mrf.mxu0 }
 0x32d   : > { %994 = vrot.lane.b32.xlu1 %v925_v37, %s1430_s18  ;;  %v1071_v37 = vrot.slane %v1284_v27, %v1562_v13 }
 0x32e   : > { %v951_v42 = vpop.f32.mrf.mxu1  ;;  %v933_v44 = vpop.f32.mrf.mxu0 }
 0x32f   : > { %996 = vrot.lane.b32.xlu0 %v927_v39, %s1430_s18  ;;  %s1885_s18 = smov 111  }
 0x330   : > { %v955_v43 = vpop.f32.mrf.mxu1 }
 0x331   : > { %1016 = vrot.lane.b32.xlu1 %v931_v41, %s1429_s17 }
 0x332   : > { %v957_v45 = vpop.f32.mrf.mxu1 }
 0x333   : > { %1018 = vrot.lane.b32.xlu0 %v933_v44, %s1429_s17  ;;  %s1360_s17 = scalar_lea.vmem %s1177_s10, 128 }
 0x334   : > { %v961_v46 = vpop.f32.mrf.mxu1  ;;  %p1361_p11 = scmp.ne.s32.totalorder %s1177_s10, %s1360_s17 }
 0x335   : > { %1060 = vrot.lane.b32.xlu1 %v949_v40, %s1426_s12 }
 0x336   : > { %v963_v47 = vpop.f32.mrf.mxu1  ;;  %p1362_p12 = pnand %p1361_p11, %p1517_p5 }
 0x337   : > { %1062 = vrot.lane.b32.xlu0 %v951_v42, %s1426_s12  ;;  %s1433_s12 = smov [#allocation3]  }
 0x338   : > { %v967_v48 = vpop.f32.mrf.mxu1  ;;  %p1363_p13 = pneg %p1362_p12  ;;  %s1364_s20 = sshll.u32 %s1433_s12, 4  ;;  %s1365_s20 = int_to_ptr.vmem [resolvable:$false] %s1364_s20 }
 0x339   : > { %1082 = vrot.lane.b32.xlu1 %v955_v43, %s1883_s13  ;;  %s1366_s9 = scalar_lea.vmem %s1365_s20, 256  ;;  %p1367_p0 = scmp.lt.s32.totalorder %s1177_s10, %s1365_s20 }
 0x33a   : > { %v969_v49 = vpop.f32.mrf.mxu1  ;;  %p1368_p1 = scmp.lt.s32.totalorder %s1366_s9, %s1360_s17 }
 0x33b   : > { %1084 = vrot.lane.b32.xlu0 %v957_v45, %s1883_s13  ;;  %v1093_v45 = vrot.slane %v1285_v34, %v1562_v13 }
 0x33c   : > { %p1369_p2 = por %p1368_p1, %p1367_p0 }
 0x33d   : > { %1104 = vrot.lane.b32.xlu1 %v961_v46, %s1884_s19  ;;  %v1097_v46 = vrot.slane %v1285_v34, %v1564_v14 }
 0x33e   : > { %p1370_p3 = pnand %p1369_p2, %p1363_p13 }
 0x33f   : > { %1106 = vrot.lane.b32.xlu0 %v963_v47, %s1884_s19 }
 0x341   : > { %1126 = vrot.lane.b32.xlu1 %v967_v48, %s1885_s18 }
 0x343   : > { %1128 = vrot.lane.b32.xlu0 %v969_v49, %s1885_s18  ;;  %s1174_s18 = scalar_lea.hbm %s1874_s8, %s1293_s24 }
 0x345   : > { %1151 = vperm.xlu1 %1357, %v1148_v50  }
 0x397   : > { %v973_v51 = vpop.permute.xlu1 %972 }
 0x399   : > { %v975_v52 = vpop.permute.xlu0 %974 }
 0x39a   : > { %v976_v63 = vsel %vm349_vm10, %v973_v51, %v975_v52  ;;  %v977_v0 = vsel %vm349_vm10, %v975_v52, %v973_v51  ;;  %v1287_v51 = vld [vmem:[%s1868_s2 + $0x10] sm:$0x3] }
 0x39b   : > { %v1039_v53 = vpop.permute.xlu1 %1038  ;;  %v990_v7 = vmul.f32 %v983_v60, %v977_v0  ;;  %v991_v8 = vmul.f32 %v987_v61, %v976_v63  ;;  %v1141_v63 = vrot.slane %v1287_v51, %v1564_v14 }
 0x39d   : > { %v1041_v54 = vpop.permute.xlu0 %1040  ;;  %v992_v22 = vadd.f32 %v990_v7, %v943_v38  ;;  %v993_v23 = vadd.f32 %v991_v8, %v945_v11  ;;  %v1075_v38 = vrot.slane %v1284_v27, %v1564_v14  ;;  %v1286_v11 = vld [vmem:[%s1868_s2 + $0xe] sm:$0x3] }
 0x39e   : > { %v1042_v32 = vsel %vm420_vm7, %v1039_v53, %v1041_v54  ;;  %v1043_v33 = vsel %vm420_vm7, %v1041_v54, %v1039_v53  ;;  %v1115_v49 = vrot.slane %v1286_v11, %v1562_v13  ;;  %v1119_v50 = vrot.slane %v1286_v11, %v1564_v14 }
 0x39f   : > { %v995_v55 = vpop.permute.xlu1 %994  ;;  %v1056_v43 = vmul.f32 %v1049_v28, %v1043_v33  ;;  %v1057_v44 = vmul.f32 %v1053_v29, %v1042_v32 }
 0x3a1   : > { %v997_v56 = vpop.permute.xlu0 %996 }
 0x3a2   : > { %v998_v5 = vsel %vm372_vm9, %v995_v55, %v997_v56  ;;  %v999_v6 = vsel %vm372_vm9, %v997_v56, %v995_v55 }
 0x3a3   : > { %v1017_v58 = vpop.permute.xlu1 %1016  ;;  %v1012_v18 = vmul.f32 %v1005_v2, %v999_v6  ;;  %v1013_v19 = vmul.f32 %v1009_v3, %v998_v5 }
 0x3a5   : > { %v1019_v62 = vpop.permute.xlu0 %1018  ;;  %v1014_v30 = vadd.f32 %v1012_v18, %v992_v22  ;;  %v1015_v31 = vadd.f32 %v1013_v19, %v993_v23 }
 0x3a6   : > { %v1020_v16 = vsel %vm396_vm8, %v1017_v58, %v1019_v62  ;;  %v1021_v17 = vsel %vm396_vm8, %v1019_v62, %v1017_v58  ;;  %v1137_v62 = vrot.slane %v1287_v51, %v1562_v13 }
 0x3a7   : > { %v1061_v4 = vpop.permute.xlu1 %1060  ;;  %v1034_v24 = vmul.f32 %v1027_v9, %v1021_v17  ;;  %v1035_v25 = vmul.f32 %v1031_v10, %v1020_v16 }
 0x3a9   : > { %v1063_v15 = vpop.permute.xlu0 %1062  ;;  %v1036_v35 = vadd.f32 %v1034_v24, %v1014_v30  ;;  %v1037_v36 = vadd.f32 %v1035_v25, %v1015_v31 }
 0x3aa   : > { %v1064_v41 = vsel %vm446_vm6, %v1061_v4, %v1063_v15  ;;  %v1065_v42 = vsel %vm446_vm6, %v1063_v15, %v1061_v4 }
 0x3ab   : > { %v1083_v20 = vpop.permute.xlu1 %1082  ;;  %v1058_v52 = vadd.f32 %v1056_v43, %v1036_v35  ;;  %v1059_v53 = vadd.f32 %v1057_v44, %v1037_v36  ;;  %v1078_v54 = vmul.f32 %v1071_v37, %v1064_v41  ;;  %v1079_v55 = vmul.f32 %v1075_v38, %v1065_v42 }
 0x3ad   : > { %v1085_v26 = vpop.permute.xlu0 %1084  ;;  %v1080_v2 = vadd.f32 %v1078_v54, %v1058_v52  ;;  %v1081_v3 = vadd.f32 %v1079_v55, %v1059_v53 }
 0x3ae   : > { %v1086_v47 = vsel %vm470_vm5, %v1083_v20, %v1085_v26  ;;  %v1087_v48 = vsel %vm470_vm5, %v1085_v26, %v1083_v20 }
 0x3af   : > { %v1105_v39 = vpop.permute.xlu1 %1104  ;;  %v1100_v59 = vmul.f32 %v1093_v45, %v1086_v47  ;;  %v1101_v60 = vmul.f32 %v1097_v46, %v1087_v48 }
 0x3b1   : > { %v1107_v40 = vpop.permute.xlu0 %1106  ;;  %v1102_v6 = vadd.f32 %v1100_v59, %v1080_v2  ;;  %v1103_v7 = vadd.f32 %v1101_v60, %v1081_v3 }
 0x3b2   : > { %v1108_v57 = vsel %vm494_vm3, %v1105_v39, %v1107_v40  ;;  %v1109_v58 = vsel %vm494_vm3, %v1107_v40, %v1105_v39 }
 0x3b3   : > { %v1127_v61 = vpop.permute.xlu1 %1126  ;;  %v1122_v4 = vmul.f32 %v1115_v49, %v1108_v57  ;;  %v1123_v5 = vmul.f32 %v1119_v50, %v1109_v58 }
 0x3b5   : > { %v1129_v56 = vpop.permute.xlu0 %1128  ;;  %v1124_v13 = vadd.f32 %v1122_v4, %v1102_v6  ;;  %v1125_v10 = vadd.f32 %v1123_v5, %v1103_v7 }
 0x3b6   : > { %v1130_v0 = vsel %vm518_vm4, %v1127_v61, %v1129_v56  ;;  %v1131_v1 = vsel %vm518_vm4, %v1129_v56, %v1127_v61 }
 0x3b7   : > { %v1144_v8 = vmul.f32 %v1137_v62, %v1130_v0  ;;  %v1145_v9 = vmul.f32 %v1141_v63, %v1131_v1 }
 0x3b9   : > { %v1146_v14 = vadd.f32 %v1144_v8, %v1124_v13  ;;  %v1147_v15 = vadd.f32 %v1145_v9, %v1125_v10 }
 0x3c0   : > { %v1152_v16 = vpop.permute.xlu1 %1151 }
 0x3c1   : > { %v1154_v12 = vadd.f32 %v1152_v16, %v1146_v14  ;;  %v1155_v17 = vadd.f32 %v1152_v16, %v1147_v15 }
 0x3c3   : > { %v1158_v18 = vcombine.low %v1154_v12, %v1155_v17 }
 0x3c5   : > { %1160 = vst [vmem:[%s315_s25] sm:$0xff] %v1158_v18 }
 0x3c6   : > { %1373 = shalt.err (!%p1370_p3)
}
 0x3c7   : > { %s1374_s21 = scalar_lea.hbm %s1174_s18, 128  ;;  %s1378_s24 = scalar_lea.hbm %s1874_s8, 256 }
 0x3c8   : > { %p1375_p4 = scmp.ne.s32.totalorder %s1174_s18, %s1374_s21  ;;  %p1379_p9 = scmp.lt.s32.totalorder %s1174_s18, %s1874_s8 }
 0x3c9   : > { %p1380_p10 = scmp.lt.s32.totalorder %s1378_s24, %s1374_s21 }
 0x3ca   : > { %p1376_p7 = pnand %p1375_p4, %p1517_p5 }
 0x3cb   : > { %p1381_p11 = por %p1380_p10, %p1379_p9 }
 0x3cc   : > { %p1377_p8 = pneg %p1376_p7 }
 0x3ce   : > { %p1382_p12 = pnand %p1381_p11, %p1377_p8 }
 0x3d0   : > { %1385 = shalt.err (!%p1382_p12)
}
 0x3d1   : > { %1306 = dma.vmem_to_hbm [thread:$0]  (%p1517_p5), %s1177_s10, 128, %s1174_s18, %s1162_s26  }
 0x3d2 PF: > { %p1312_p13 = scmp.ge.s32.totalorder %s1420_s30, 2  ;;  %s1188_s19 = sand.u32 1, %s1408_s27  }
 0x3d3   : > { %s1189_s17 = scalar_lea.sflag [#allocation4], %s1188_s19 }
 0x3d4   : > { %p1309_p0 = pnand %p1312_p13, %p1521_p6 }
 0x3d6   : > { %p1310_p1 = pneg %p1309_p0 }
 0x3d8   : > { %1403 = dma.done.wait (%p1310_p1), %s1189_s17, 128  }
 0x3d9   : > { %1405 = vsyncadd (%p1310_p1), %s1189_s17, 4294967168  ;;  %p18_p2 = scmp.ge.s32.totalorder %s1504_s11, 4   ;;  %s1886_s27 = smov %s1412_s28 }
 0x3da   : > { %s1887_s28 = smov %s1416_s29  ;;  %s1888_s29 = smov %s1515_s14 }
 0x3db   : > { %s1889_s30 = smov %s1504_s11  ;;  %20 = sbr.rel (!%p18_p2) target bundleno = 3 (0x3), region = 97 }
 0x3e0   :  { %1194 = vsyncpa [#allocation4], 1 }
 0x3e1   :  { %1196 = vsyncpa [#allocation4 + $0x1], 1 }

</bundles_post_ra>
